<compile_context>
chip_gen: v5e
topology: v5e:2x2
jax: 0.10.0
libtpu: 0.0.40
codegen_flags: <defaults>
</compile_context>

<pallas_src>
import functools

import jax
import jax.numpy as jnp
from jax import lax
from jax.experimental import pallas as pl
from jax.experimental.pallas import tpu as pltpu


def _projection_head_kernel(x_ref, w1_ref, b1_ref, gamma_ref, beta_ref,
                            w2_ref, b2_ref, o_ref):
    # Cast MXU operands to bf16 in-kernel (no-op if the caller already passed
    # bf16; otherwise a free VPU cast hidden under MXU work). Accumulation and
    # all elementwise math (GELU, LayerNorm) stay f32.

    # ---- dense_to_hidden: x @ W1 + b1 ----
    x = x_ref[...].astype(jnp.bfloat16)
    w1 = w1_ref[...].astype(jnp.bfloat16)
    h = jnp.dot(x, w1, preferred_element_type=jnp.float32)
    h = h + b1_ref[...]

    # ---- exact GELU (erf form, matches torch.nn.functional.gelu default) ----
    inv_sqrt2 = jnp.float32(0.7071067811865476)
    h = 0.5 * h * (1.0 + lax.erf(h * inv_sqrt2))

    # ---- LayerNorm over last dim, eps=1e-12, biased variance (torch) ----
    mean = jnp.mean(h, axis=-1, keepdims=True)
    centered = h - mean
    var = jnp.mean(centered * centered, axis=-1, keepdims=True)
    h = centered * lax.rsqrt(var + jnp.float32(1e-12))
    h = h * gamma_ref[...] + beta_ref[...]

    # ---- dense_to_output: h @ W2 + b2 ----
    w2 = w2_ref[...].astype(jnp.bfloat16)
    y = jnp.dot(h.astype(jnp.bfloat16), w2, preferred_element_type=jnp.float32)
    y = y + b2_ref[...]

    o_ref[...] = y.astype(o_ref.dtype)


@functools.partial(jax.jit, static_argnames=("block_b", "out_dtype"))
def _forward(x, w1, b1, gamma, beta, w2, b2, *, block_b, out_dtype):
    B, H = x.shape
    P = w1.shape[1]
    assert B % block_b == 0, "batch must be divisible by block_b"

    # 1-D params reshaped to (1, P); kept / promoted to f32 (tiny).
    b1_f = jnp.reshape(b1, (1, P)).astype(jnp.float32)
    gamma_f = jnp.reshape(gamma, (1, P)).astype(jnp.float32)
    beta_f = jnp.reshape(beta, (1, P)).astype(jnp.float32)
    b2_f = jnp.reshape(b2, (1, P)).astype(jnp.float32)

    def const_spec(shape):
        # Grid-invariant operand: constant index_map -> fetched once.
        return pl.BlockSpec(shape, lambda i: (0, 0))

    in_specs = [
        pl.BlockSpec((block_b, H), lambda i: (i, 0)),   # x tile (pipelined)
        const_spec((H, P)),                             # W1
        const_spec((1, P)),                             # b1
        const_spec((1, P)),                             # gamma
        const_spec((1, P)),                             # beta
        const_spec((P, P)),                             # W2
        const_spec((1, P)),                             # b2
    ]
    out_specs = pl.BlockSpec((block_b, P), lambda i: (i, 0))

    operands = (x, w1, b1_f, gamma_f, beta_f, w2, b2_f)
    in_bytes = sum(a.size * a.dtype.itemsize for a in operands)
    out_bytes = B * P * jnp.dtype(out_dtype).itemsize
    cost = pl.CostEstimate(
        flops=2 * B * H * P + 2 * B * P * P,
        transcendentals=B * P,              # one erf per hidden activation
        bytes_accessed=in_bytes + out_bytes,
    )

    return pl.pallas_call(
        _projection_head_kernel,
        out_shape=jax.ShapeDtypeStruct((B, P), out_dtype),
        grid=(B // block_b,),
        in_specs=in_specs,
        out_specs=out_specs,
        compiler_params=pltpu.CompilerParams(
            dimension_semantics=("parallel",),
            vmem_limit_bytes=48 * 1024 * 1024,  # headroom under v7x's 64 MiB
        ),
        cost_estimate=cost,
    )(*operands)


def _pick_block_b(batch, requested):
    """Pick a batch tile.

    Constraints / preferences:
      * block_b must be a multiple of 8 (sublane rule) or equal the full batch.
      * Prefer >= 2 grid steps so v7x's two TensorCores both get work
        (grid axis is marked "parallel").
      * Among valid candidates, pick the largest (amortizes the ~0.35 us
        per-grid-step pipeline overhead on fast-MXU chips).
    """
    requested = max(1, min(requested, batch))
    cands = [d for d in range(8, requested + 1, 8) if batch % d == 0]
    if not cands:
        return batch  # full-array block is always legal (e.g. tiny batches)
    multi = [d for d in cands if batch // d >= 2]
    return max(multi) if multi else max(cands)


def bert_projection_head(x, w1, b1, gamma, beta, w2, b2, *,
                         block_b=512, out_dtype=None):
    """x: (B, hidden_size) -> (B, projection_size).

    Pass bf16 weights (pre-cast once, outside the per-call path) and/or
    out_dtype=jnp.bfloat16 to minimize HBM traffic; f32 everywhere also works.
    """
    bb = _pick_block_b(x.shape[0], block_b)
    out_dt = x.dtype if out_dtype is None else out_dtype
    return _forward(x, w1, b1, gamma, beta, w2, b2,
                    block_b=bb, out_dtype=out_dt)


def _reference(x, w1, b1, gamma, beta, w2, b2):
    h = x.astype(jnp.float32) @ w1.astype(jnp.float32) + b1.reshape(1, -1)
    h = jax.nn.gelu(h, approximate=False)
    mean = jnp.mean(h, axis=-1, keepdims=True)
    var = jnp.mean((h - mean) ** 2, axis=-1, keepdims=True)
    h = (h - mean) / jnp.sqrt(var + 1e-12)
    h = h * gamma.reshape(1, -1) + beta.reshape(1, -1)
    return (h @ w2.astype(jnp.float32) + b2.reshape(1, -1)).astype(x.dtype)


if __name__ == "__main__":
    # Small shapes consistent with the module: hidden_size=32, projection_size=128.
    batch, hidden_size, projection_size = 8, 32, 128

    key = jax.random.PRNGKey(0)
    kx, k1, k2, k3, k4, k5, k6 = jax.random.split(key, 7)

    x = jax.random.normal(kx, (batch, hidden_size), dtype=jnp.float32)

    # Deterministic synthetic parameters (shapes mirror nn.Linear / nn.LayerNorm,
    # with linear weights pre-transposed to (in, out)).
    w1 = jax.random.normal(k1, (hidden_size, projection_size), jnp.float32) * 0.05
    b1 = jax.random.normal(k2, (projection_size,), jnp.float32) * 0.01
    gamma = 1.0 + jax.random.normal(k3, (projection_size,), jnp.float32) * 0.01
    beta = jax.random.normal(k4, (projection_size,), jnp.float32) * 0.01
    w2 = jax.random.normal(k5, (projection_size, projection_size), jnp.float32) * 0.05
    b2 = jax.random.normal(k6, (projection_size,), jnp.float32) * 0.01

    # Pre-cast weights to bf16 ONCE outside the per-call path (no per-call
    # wrapper cast); the kernel's in-body astype is then a no-op.
    w1_bf = w1.astype(jnp.bfloat16)
    w2_bf = w2.astype(jnp.bfloat16)

    out = bert_projection_head(x, w1_bf, b1, gamma, beta, w2_bf, b2)
    out = jax.block_until_ready(out)

    ref = _reference(x, w1, b1, gamma, beta, w2, b2)
    assert out.shape == (batch, projection_size)
    # bf16 MXU operands (f32 accumulation) vs. a pure-f32 reference.
    assert jnp.allclose(out, ref, atol=5e-2, rtol=5e-2), "mismatch vs reference"

    print("KERNEL_OK")
</pallas_src>

<mosaic_0001>
module attributes {stable_mosaic.version = 11 : i64} {
  func.func @_projection_head_kernel(%arg0: i32, %arg1: memref<8x32xf32, #tpu.memory_space<vmem>>, %arg2: memref<32x128xbf16, #tpu.memory_space<vmem>>, %arg3: memref<1x128xf32, #tpu.memory_space<vmem>>, %arg4: memref<1x128xf32, #tpu.memory_space<vmem>>, %arg5: memref<1x128xf32, #tpu.memory_space<vmem>>, %arg6: memref<128x128xbf16, #tpu.memory_space<vmem>>, %arg7: memref<1x128xf32, #tpu.memory_space<vmem>>, %arg8: memref<8x128xf32, #tpu.memory_space<vmem>>) attributes {dimension_semantics = [#tpu.dimension_semantics<parallel>], iteration_bounds = array<i64: 1>, scalar_prefetch = 0 : i64, scratch_operands = 0 : i64, tpu.core_type = #tpu.core_type<tc>, window_params = [{transform_indices = @transform_0, window_bounds = array<i64: 8, 32>}, {pipeline_mode = #tpu.pipeline_mode<synchronous>, transform_indices = @transform_1, window_bounds = array<i64: 32, 128>}, {pipeline_mode = #tpu.pipeline_mode<synchronous>, transform_indices = @transform_2, window_bounds = array<i64: 1, 128>}, {pipeline_mode = #tpu.pipeline_mode<synchronous>, transform_indices = @transform_3, window_bounds = array<i64: 1, 128>}, {pipeline_mode = #tpu.pipeline_mode<synchronous>, transform_indices = @transform_4, window_bounds = array<i64: 1, 128>}, {pipeline_mode = #tpu.pipeline_mode<synchronous>, transform_indices = @transform_5, window_bounds = array<i64: 128, 128>}, {pipeline_mode = #tpu.pipeline_mode<synchronous>, transform_indices = @transform_6, window_bounds = array<i64: 1, 128>}, {transform_indices = @transform_7, window_bounds = array<i64: 8, 128>}]} {
    %c0 = arith.constant 0 : index
    %c0_0 = arith.constant 0 : index
    %0 = vector.load %arg1[%c0, %c0_0] : memref<8x32xf32, #tpu.memory_space<vmem>>, vector<8x32xf32>
    %1 = arith.truncf %0 : vector<8x32xf32> to vector<8x32xbf16>
    %c0_1 = arith.constant 0 : index
    %c0_2 = arith.constant 0 : index
    %2 = vector.load %arg2[%c0_1, %c0_2] : memref<32x128xbf16, #tpu.memory_space<vmem>>, vector<32x128xbf16>
    %cst = arith.constant dense<0.000000e+00> : vector<8x128xf32>
    %3 = tpu.matmul %1, %2, %cst {dimension_numbers = #tpu.dot_dimension_numbers<[1], [0], [0], [1], [0, 0, 1, 1], [], []>} : vector<8x32xbf16>, vector<32x128xbf16>, vector<8x128xf32> -> vector<8x128xf32>
    %c0_3 = arith.constant 0 : index
    %c0_4 = arith.constant 0 : index
    %4 = vector.load %arg3[%c0_3, %c0_4] : memref<1x128xf32, #tpu.memory_space<vmem>>, vector<1x128xf32>
    %5 = vector.broadcast %4 : vector<1x128xf32> to vector<8x128xf32>
    %6 = arith.addf %3, %5 : vector<8x128xf32>
    %cst_5 = arith.constant 5.000000e-01 : f32
    %7 = vector.broadcast %cst_5 : f32 to vector<8x128xf32>
    %8 = arith.mulf %7, %6 : vector<8x128xf32>
    %cst_6 = arith.constant 0.707106769 : f32
    %9 = vector.broadcast %cst_6 : f32 to vector<8x128xf32>
    %10 = arith.mulf %6, %9 : vector<8x128xf32>
    %11 = math.erf %10 : vector<8x128xf32>
    %cst_7 = arith.constant 1.000000e+00 : f32
    %12 = vector.broadcast %cst_7 : f32 to vector<8x128xf32>
    %13 = arith.addf %12, %11 : vector<8x128xf32>
    %14 = arith.mulf %8, %13 : vector<8x128xf32>
    %cst_8 = arith.constant dense<0.000000e+00> : vector<8xf32>
    %15 = vector.multi_reduction <add>, %14, %cst_8 [1] : vector<8x128xf32> to vector<8xf32>
    %16 = vector.shape_cast %15 : vector<8xf32> to vector<8x1xf32>
    %cst_9 = arith.constant 1.280000e+02 : f32
    %17 = vector.broadcast %cst_9 : f32 to vector<8x1xf32>
    %18 = arith.divf %16, %17 : vector<8x1xf32>
    %19 = vector.broadcast %18 : vector<8x1xf32> to vector<8x128xf32>
    %20 = arith.subf %14, %19 : vector<8x128xf32>
    %21 = arith.mulf %20, %20 : vector<8x128xf32>
    %cst_10 = arith.constant dense<0.000000e+00> : vector<8xf32>
    %22 = vector.multi_reduction <add>, %21, %cst_10 [1] : vector<8x128xf32> to vector<8xf32>
    %23 = vector.shape_cast %22 : vector<8xf32> to vector<8x1xf32>
    %cst_11 = arith.constant 1.280000e+02 : f32
    %24 = vector.broadcast %cst_11 : f32 to vector<8x1xf32>
    %25 = arith.divf %23, %24 : vector<8x1xf32>
    %cst_12 = arith.constant 9.99999996E-13 : f32
    %26 = vector.broadcast %cst_12 : f32 to vector<8x1xf32>
    %27 = arith.addf %25, %26 : vector<8x1xf32>
    %28 = math.rsqrt %27 : vector<8x1xf32>
    %29 = vector.broadcast %28 : vector<8x1xf32> to vector<8x128xf32>
    %30 = arith.mulf %20, %29 : vector<8x128xf32>
    %c0_13 = arith.constant 0 : index
    %c0_14 = arith.constant 0 : index
    %31 = vector.load %arg4[%c0_13, %c0_14] : memref<1x128xf32, #tpu.memory_space<vmem>>, vector<1x128xf32>
    %32 = vector.broadcast %31 : vector<1x128xf32> to vector<8x128xf32>
    %33 = arith.mulf %30, %32 : vector<8x128xf32>
    %c0_15 = arith.constant 0 : index
    %c0_16 = arith.constant 0 : index
    %34 = vector.load %arg5[%c0_15, %c0_16] : memref<1x128xf32, #tpu.memory_space<vmem>>, vector<1x128xf32>
    %35 = vector.broadcast %34 : vector<1x128xf32> to vector<8x128xf32>
    %36 = arith.addf %33, %35 : vector<8x128xf32>
    %c0_17 = arith.constant 0 : index
    %c0_18 = arith.constant 0 : index
    %37 = vector.load %arg6[%c0_17, %c0_18] : memref<128x128xbf16, #tpu.memory_space<vmem>>, vector<128x128xbf16>
    %38 = arith.truncf %36 : vector<8x128xf32> to vector<8x128xbf16>
    %cst_19 = arith.constant dense<0.000000e+00> : vector<8x128xf32>
    %39 = tpu.matmul %38, %37, %cst_19 {dimension_numbers = #tpu.dot_dimension_numbers<[1], [0], [0], [1], [0, 0, 1, 1], [], []>} : vector<8x128xbf16>, vector<128x128xbf16>, vector<8x128xf32> -> vector<8x128xf32>
    %c0_20 = arith.constant 0 : index
    %c0_21 = arith.constant 0 : index
    %40 = vector.load %arg7[%c0_20, %c0_21] : memref<1x128xf32, #tpu.memory_space<vmem>>, vector<1x128xf32>
    %41 = vector.broadcast %40 : vector<1x128xf32> to vector<8x128xf32>
    %42 = arith.addf %39, %41 : vector<8x128xf32>
    %c0_22 = arith.constant 0 : index
    %c0_23 = arith.constant 0 : index
    %43 = vector.load %arg8[%c0_22, %c0_23] : memref<8x128xf32, #tpu.memory_space<vmem>>, vector<8x128xf32>
    tpu.vector_store %arg8[%c0_22, %c0_23], %42 {strides = array<i32>} : memref<8x128xf32, #tpu.memory_space<vmem>>, vector<8x128xf32>,
    return
  }
  func.func @transform_0(%arg0: i32) -> (i32, i32) {
    %c0_i32 = arith.constant 0 : i32
    %c0_i32_0 = arith.constant 0 : i32
    return %arg0, %c0_i32 : i32, i32
  }
  func.func @transform_1(%arg0: i32) -> (i32, i32) {
    %c0_i32 = arith.constant 0 : i32
    %c0_i32_0 = arith.constant 0 : i32
    %c0_i32_1 = arith.constant 0 : i32
    return %c0_i32, %c0_i32_0 : i32, i32
  }
  func.func @transform_2(%arg0: i32) -> (i32, i32) {
    %c0_i32 = arith.constant 0 : i32
    %c0_i32_0 = arith.constant 0 : i32
    %c0_i32_1 = arith.constant 0 : i32
    return %c0_i32, %c0_i32_0 : i32, i32
  }
  func.func @transform_3(%arg0: i32) -> (i32, i32) {
    %c0_i32 = arith.constant 0 : i32
    %c0_i32_0 = arith.constant 0 : i32
    %c0_i32_1 = arith.constant 0 : i32
    return %c0_i32, %c0_i32_0 : i32, i32
  }
  func.func @transform_4(%arg0: i32) -> (i32, i32) {
    %c0_i32 = arith.constant 0 : i32
    %c0_i32_0 = arith.constant 0 : i32
    %c0_i32_1 = arith.constant 0 : i32
    return %c0_i32, %c0_i32_0 : i32, i32
  }
  func.func @transform_5(%arg0: i32) -> (i32, i32) {
    %c0_i32 = arith.constant 0 : i32
    %c0_i32_0 = arith.constant 0 : i32
    %c0_i32_1 = arith.constant 0 : i32
    return %c0_i32, %c0_i32_0 : i32, i32
  }
  func.func @transform_6(%arg0: i32) -> (i32, i32) {
    %c0_i32 = arith.constant 0 : i32
    %c0_i32_0 = arith.constant 0 : i32
    %c0_i32_1 = arith.constant 0 : i32
    return %c0_i32, %c0_i32_0 : i32, i32
  }
  func.func @transform_7(%arg0: i32) -> (i32, i32) {
    %c0_i32 = arith.constant 0 : i32
    %c0_i32_0 = arith.constant 0 : i32
    return %arg0, %c0_i32 : i32, i32
  }
}

</mosaic_0001>

<bundles_post_ra>
// kernel: _forward.1
= control target key start
LH: loop header
LB: loop body
LE: loop exit
PB: predicated region body
PF: predicated region fallthrough
CT: control target
= control target key end

     0   :  { %12 = vsyncpa [#allocation3], 0  ;;  %s536_s0 = inlined_call_operand.hbm [shape: f32[8,32], index: 0, kind: input, shape index: {}]   ;;  %s537_s1 = inlined_call_operand.hbm [shape: bf16[32,128], index: 1, kind: input, shape index: {}]   ;;  %s538_s2 = inlined_call_operand.vmem [shape: f32[1,128], index: 2, kind: input, shape index: {}]   ;;  %s539_s3 = inlined_call_operand.vmem [shape: f32[1,128], index: 3, kind: input, shape index: {}]   ;;  %s540_s4 = inlined_call_operand.vmem [shape: f32[1,128], index: 4, kind: input, shape index: {}]   ;;  %s541_s5 = inlined_call_operand.hbm [shape: bf16[128,128], index: 5, kind: input, shape index: {}]   ;;  %s542_s6 = inlined_call_operand.vmem [shape: f32[1,128], index: 6, kind: input, shape index: {}]   ;;  %s543_s7 = inlined_call_operand.hbm [shape: f32[8,128], index: 7, kind: output, shape index: {}]  }
   0x1   :  { %13 = vsyncpa [#allocation6], 0  ;;  %s30_s26 = sshll.u32 %s537_s1, 4  ;;  %s31_s26 = int_to_ptr.hbm [resolvable:$true] %s30_s26 }
   0x2   :  { %14 = vsyncpa [#allocation4], 0  ;;  %s465_s27 = smov [#allocation5]   ;;  %s20_s8 = sshll.u32 %s536_s0, 4  ;;  %s21_s8 = int_to_ptr.hbm [resolvable:$true] %s20_s8 }
   0x3   :  { %s32_s28 = sshll.u32 %s465_s27, 4  ;;  %s466_s9 = smov 64   ;;  %s33_s28 = int_to_ptr.vmem [resolvable:$true] %s32_s28 }
   0x4   :  { %s467_s10 = smov 4   ;;  %s468_s11 = smov [#allocation2]  }
   0x5   :  { %38 = dma.hbm_to_vmem [thread:$0]  %s31_s26, 256, %s33_s28, [#allocation6], %s466_s9, %s466_s9, %s467_s10  }
   0x6   :  { %s22_s12 = sshll.u32 %s468_s11, 4  ;;  %s49_s15 = sshll.u32 %s541_s5, 4  ;;  %s23_s12 = int_to_ptr.vmem [resolvable:$true] %s22_s12  ;;  %s50_s15 = int_to_ptr.hbm [resolvable:$true] %s49_s15 }
   0x7   :  { %25 = dma.hbm_to_vmem [thread:$0]  %s21_s8, 128, %s23_s12, [#allocation3]  }
   0x8   :  { %s469_s1 = smov [#allocation7]  }
   0x9   :  { %s51_s16 = sshll.u32 %s469_s1, 4  ;;  %s52_s16 = int_to_ptr.vmem [resolvable:$true] %s51_s16 }
   0xa   :  { %57 = dma.hbm_to_vmem [thread:$0]  %s50_s15, 1024, %s52_s16, [#allocation6], %s466_s9, %s466_s9, %s467_s10  }
   0xb   :  { %459 = dma.done.wait [#allocation3], 128  }
   0xc   :  { %460 = vsyncadd [#allocation3], 4294967168 }
   0xd   :  { %461 = dma.done.wait [#allocation6], 1280  }
   0xe   :  { %462 = vsyncadd [#allocation6], 4294966016  ;;  %v337_v0 = vld [vmem:[#allocation5 + $0x8] sm:$0xff]  ;;  %v336_v1 = vld [vmem:[#allocation5] sm:$0xff]  ;;  %vm95_vm0 = vcmask 261120   ;;  %v470_v47 = vmov 128.0  }
   0xf   :  { %105 = vmatpush.bf16.msra.mxu0 %v337_v0  ;;  %v73_v2 = vld [vmem:[#allocation2] sm:$0xff]  ;;  %v345_v48 = vld [vmem:[#allocation7 + $0x38] sm:$0xff]  ;;  %v344_v59 = vld [vmem:[#allocation7 + $0x30] sm:$0xff]  ;;  %s471_s22 = smov [#allocation8]  }
  0x10   :  { %v74_v3 = vpack.c.bf16 %v73_v2, %v73_v2  ;;  %v353_v4 = vld [vmem:[%s538_s2] ss:$0 sm:$0xff]  ;;  %262 = vmatpush.bf16.msra.mxu1 %v345_v48  ;;  %v342_v61 = vld [vmem:[#allocation7 + $0x20] sm:$0xff]  ;;  %v341_v62 = vld [vmem:[#allocation7 + $0x18] sm:$0xff]  ;;  %s281_s23 = sshll.u32 %s471_s22, 4  ;;  %s282_s23 = int_to_ptr.vmem [resolvable:$true] %s281_s23 }
  0x11   :  { %v343_v60 = vld [vmem:[#allocation7 + $0x28] sm:$0xff]  ;;  %v340_v63 = vld [vmem:[#allocation7 + $0x10] sm:$0xff] }
  0x12   :  { %v339_v0 = vld [vmem:[#allocation7 + $0x8] sm:$0xff] }
  0x13   :  { %106 = vmatpush.bf16.msra.mxu0 %v336_v1  ;;  %v338_v1 = vld [vmem:[#allocation7] sm:$0xff] }
  0x14   :  { %263 = vmatpush.bf16.msra.mxu1 %v344_v59 }
  0x16   :  { %302 = vmatmul.msk.bf16.vlgmr.msra.gmra.mxu0 %vm95_vm0, %v74_v3 }
  0x18   :  { %264 = vmatpush.bf16.msra.mxu1 %v343_v60 }
  0x1c   :  { %265 = vmatpush.bf16.msra.mxu1 %v342_v61 }
  0x20   :  { %266 = vmatpush.bf16.msra.mxu1 %v341_v62 }
  0x24   :  { %267 = vmatpush.bf16.msra.mxu1 %v340_v63 }
  0x28   :  { %268 = vmatpush.bf16.msra.mxu1 %v339_v0 }
  0x2c   :  { %269 = vmatpush.bf16.msra.mxu1 %v338_v1 }
  0x93   :  { %v108_v5 = vpop.f32.mrf.mxu0 }
  0x94   :  { %v109_v6 = vadd.f32 %v353_v4, %v108_v5 }
  0x96   :  { %v113_v7 = vmul.f32 0.70710677, %v109_v6  ;;  %v112_v44 = vmul.f32 0.5, %v109_v6 }
  0x98   :  { %v114_v8 = vmul.f32 %v113_v7, %v113_v7 }
  0x9a   :  { %v115_v9 = vmin.f32 %v114_v8, 16.0 }
  0x9b   :  { %v110_v10 = vpop.f32.mrf.mxu0 }
  0x9c   :  { %v116_v11 = vmul.f32 2.1237322e-06, %v115_v9  ;;  %v127_v12 = vmul.f32 3.8918573e-05, %v115_v9 }
  0x9e   :  { %v117_v13 = vadd.f32 0.00028619796, %v116_v11  ;;  %v128_v14 = vadd.f32 0.001143296, %v127_v12  ;;  %v354_v11 = vld [vmem:[%s539_s3] ss:$0 sm:$0xff] }
  0x9f   :  { %s283_s3 = sshll.u32 %s543_s7, 4  ;;  %s284_s3 = int_to_ptr.hbm [resolvable:$true] %s283_s3 }
  0xa0   :  { %v118_v15 = vmul.f32 %v117_v13, %v115_v9  ;;  %v129_v16 = vmul.f32 %v128_v14, %v115_v9  ;;  %v355_v14 = vld [vmem:[%s540_s4] ss:$0 sm:$0xff] }
  0xa2   :  { %v130_v17 = vadd.f32 0.014752088, %v129_v16  ;;  %v119_v18 = vadd.f32 0.0036580483, %v118_v15 }
  0xa4   :  { %v131_v19 = vmul.f32 %v130_v17, %v115_v9  ;;  %v120_v21 = vmul.f32 %v119_v18, %v115_v9  ;;  %v356_v18 = vld [vmem:[%s542_s6] ss:$0 sm:$0xff] }
  0xa6   :  { %v132_v20 = vadd.f32 0.112945676, %v131_v19  ;;  %v121_v24 = vadd.f32 0.05243302, %v120_v21 }
  0xa8   :  { %v133_v22 = vmul.f32 %v132_v20, %v115_v9  ;;  %v122_v27 = vmul.f32 %v121_v24, %v115_v9 }
  0xaa   :  { %v134_v23 = vadd.f32 0.4994258, %v133_v22  ;;  %v123_v28 = vadd.f32 0.18741608, %v122_v27 }
  0xac   :  { %v135_v25 = vmul.f32 %v134_v23, %v115_v9  ;;  %v124_v30 = vmul.f32 %v123_v28, %v115_v9 }
  0xae   :  { %v136_v26 = vadd.f32 1.0, %v135_v25  ;;  %v125_v34 = vadd.f32 1.1283791, %v124_v30 }
  0xb0   :  { %357 = vrcp.f32 %v136_v26  ;;  %v148_v33 = vand.u32 2147483648, %v136_v26  ;;  %v146_v36 = vand.u32 2147483647, %v136_v26  ;;  %vm142_vm2 = vweird.f32 %v136_v26 }
  0xb1   :  { %v126_v39 = vmul.f32 %v125_v34, %v113_v7  ;;  %359 = vrcp.f32 %v470_v47 }
  0xb2   :  { %v149_v38 = vor.u32 1.1754944e-38, %v148_v33  ;;  %vm147_vm4 = vcmp.eq.f32.partialorder %v146_v36, 8.507059e+37 }
  0xb6   :  { %v358_v29 = vpop.eup %357 }
  0xb7   :  { %v138_v31 = vmul.f32 %v358_v29, %v136_v26  ;;  %vm143_vm1 = vweird.f32 %v358_v29  ;;  %v360_v49 = vpop.eup %359 }
  0xb8   :  { %vm144_vm3 = vmor %vm142_vm2, %vm143_vm1  ;;  %v159_v50 = vmul.f32 128.0, %v360_v49  ;;  %vm163_vm5 = vweird.f32 %v360_v49 }
  0xb9   :  { %v139_v32 = vsub.f32 1.0, %v138_v31 }
  0xba   :  { %v160_v51 = vsub.f32 1.0, %v159_v50 }
  0xbb   :  { %v140_v35 = vmul.f32 %v358_v29, %v139_v32 }
  0xbc   :  { %v161_v52 = vmul.f32 %v360_v49, %v160_v51 }
  0xbd   :  { %v141_v37 = vadd.f32 %v358_v29, %v140_v35 }
  0xbe   :  { %v162_v53 = vadd.f32 %v360_v49, %v161_v52 }
  0xbf   :  { %v145_v40 = vsel %vm144_vm3, %v358_v29, %v141_v37 }
  0xc0   :  { %v150_v41 = vsel %vm147_vm4, %v149_v38, %v145_v40  ;;  %v164_v54 = vsel %vm163_vm5, %v360_v49, %v162_v53 }
  0xc1   :  { %v151_v42 = vmul.f32 %v150_v41, %v126_v39 }
  0xc3   :  { %v303_v43 = vclamps-f32 %v151_v42, 1.0 }
  0xc5   :  { %v154_v45 = vadd.f32 1.0, %v303_v43 }
  0xc7   :  { %v155_v46 = vmul.f32 %v154_v45, %v112_v44 }
  0xc9   :  { %156 = vadd.xlane.f32.xlu0 %v155_v46 }
 0x13c   :  { %v157_v55 = vpop.xlane.xlu0 %156 }
 0x13d   :  { %v165_v56 = vmul.f32 %v164_v54, %v157_v55 }
 0x13f   :  { %v166_v57 = vsub.f32 %v155_v46, %v165_v56 }
 0x141   :  { %v167_v58 = vmul.f32 %v166_v57, %v166_v57 }
 0x143   :  { %168 = vadd.xlane.f32.xlu0 %v167_v58 }
 0x1b6   :  { %v169_v2 = vpop.xlane.xlu0 %168 }
 0x1b7   :  { %v170_v3 = vmul.f32 %v169_v2, %v164_v54 }
 0x1b9   :  { %v171_v4 = vadd.f32 1e-12, %v170_v3 }
 0x1bb   :  { %361 = vrsqrt.f32 %v171_v4  ;;  %vm178_vm7 = vweird.f32 %v171_v4 }
 0x1c1   :  { %v362_v5 = vpop.eup %361 }
 0x1c2   :  { %v173_v6 = vmul.f32 %v362_v5, %v171_v4  ;;  %vm179_vm6 = vweird.f32 %v362_v5 }
 0x1c3   :  { %vm180_vm8 = vmor %vm178_vm7, %vm179_vm6 }
 0x1c4   :  { %v174_v7 = vmul.f32 %v362_v5, %v173_v6 }
 0x1c6   :  { %v175_v8 = vmul.f32 0.5, %v174_v7 }
 0x1c8   :  { %v176_v9 = vsub.f32 1.5, %v175_v8 }
 0x1ca   :  { %v177_v10 = vmul.f32 %v362_v5, %v176_v9 }
 0x1cc   :  { %v181_v12 = vsel %vm180_vm8, %v362_v5, %v177_v10 }
 0x1cd   :  { %v182_v13 = vmul.f32 %v181_v12, %v166_v57 }
 0x1cf   :  { %v187_v15 = vmul.f32 %v354_v11, %v182_v13 }
 0x1d1   :  { %v192_v16 = vadd.f32 %v355_v14, %v187_v15 }
 0x1d3   :  { %v209_v17 = vpack.c.bf16 %v192_v16, %v192_v16 }
 0x1d5   :  { %270 = vmatmul.bf16.vlgmr.msra.gmra.mxu1 %v209_v17 }
 0x252   :  { %v271_v19 = vpop.f32.mrf.mxu1 }
 0x253   :  { %v272_v20 = vadd.f32 %v356_v18, %v271_v19 }
 0x255   :  { %275 = vst [vmem:[#allocation8] sm:$0xff] %v272_v20 }
 0x256   :  { %286 = dma.vmem_to_hbm [thread:$0]  %s282_s23, 128, %s284_s3, [#allocation4]  }
 0x25a   :  { %v273_v21 = vpop.f32.mrf.mxu1 }
 0x25b   :  { %463 = dma.done.wait [#allocation4], 128  }
 0x25c   :  { %464 = vsyncadd [#allocation4], 4294967168 }
 0x25d   :  { %291 = vsyncpa [#allocation3], 1 }
 0x25e   :  { %292 = vsyncpa [#allocation6], 1 }
 0x25f   :  { %293 = vsyncpa [#allocation4], 1 }

</bundles_post_ra>
